<compile_context>
chip_gen: v6e
topology: v6e:2x2x1
jax: 0.10.0
libtpu: 0.0.40
codegen_flags: <defaults>
</compile_context>

<pallas_src>
import jax
import jax.numpy as jnp
import numpy as np
from jax.experimental import pallas as pl
from jax.experimental.pallas import tpu as pltpu


# ----------------------------------------------------------------------------- kernel
def mlp_kernel(x_ref, w1_ref, b1_ref, w2_ref, b2_ref, o_ref, acc_ref):
    """One (batch-tile, hidden-tile) grid step of relu(x@W1+b1)@W2+b2."""
    h = pl.program_id(1)

    @pl.when(h == 0)
    def _init():
        acc_ref[...] = jnp.zeros_like(acc_ref)

    # Cast the activation tile to the MXU feed dtype in-kernel (free on the VPU,
    # avoids a separate XLA cast pass over x in HBM).
    x = x_ref[...].astype(w1_ref.dtype)
    hid = jnp.dot(x, w1_ref[...], preferred_element_type=jnp.float32)
    hid = jnp.maximum(hid + b1_ref[...], 0.0)            # f32 bias + ReLU epilogue
    acc_ref[...] += jnp.dot(hid.astype(w2_ref.dtype), w2_ref[...],
                            preferred_element_type=jnp.float32)

    @pl.when(h == pl.num_programs(1) - 1)
    def _finalize():
        o_ref[...] = (acc_ref[...] + b2_ref[...]).astype(o_ref.dtype)


# ------------------------------------------------------------------------- helpers
def _round_up(n, m):
    return ((n + m - 1) // m) * m


def _feature_pad(d):
    """Lane-dense padding: multiples of 128, promoted to 256 when nearly free
    (v6e/v7x MXUs are 2x256x256; 128-wide N/K tiles feed only half the array)."""
    p128 = _round_up(d, 128)
    p256 = _round_up(d, 256)
    if p256 == p128 or (p256 - d) <= max(32, d // 8):
        return p256
    return p128


def _pad2(a, rows, cols):
    pr, pc = rows - a.shape[0], cols - a.shape[1]
    if pr == 0 and pc == 0:
        return a
    return jnp.pad(a, ((0, pr), (0, pc)))


def _itemsize(dt):
    return np.dtype(dt).itemsize


def _vmem_capacity_bytes():
    try:
        info = pltpu.get_tpu_info()
        cap = getattr(info, "vmem_capacity_bytes", None)
        if cap:
            return int(cap)
    except Exception:
        pass
    return 64 * 1024 * 1024  # conservative default (v7x per-TensorCore)


def _per_tile_bytes(tb, th, din, dout_p, x_isz, o_isz):
    """VMEM cost that scales with the batch tile (double-buffered x/out, f32
    accumulator scratch, headroom for the f32 hidden intermediate)."""
    return (2 * tb * din * x_isz
            + 2 * tb * dout_p * o_isz
            + tb * dout_p * 4
            + 2 * tb * th * 4)


def _choose_batch_tile(B, fits):
    """Largest sublane-aligned batch tile that fits VMEM, preferring >=2 grid steps
    (so the 'parallel' batch axis can shard across TensorCores) and <=~15% padded-row
    waste on awkward batch sizes."""
    B8 = _round_up(max(B, 1), 8)
    if B8 <= 8:
        return B8 if fits(B8) else None
    best = None
    for tb in (512, 256, 128, 64, 32, 16, 8):
        if tb > B8 or not fits(tb):
            continue
        if best is None:
            best = tb
        bp = _round_up(B8, tb)
        if bp // tb >= 2 and (bp - B) <= max(int(0.15 * bp), 8):
            return tb
    return best


# ------------------------------------------------------------------------- wrapper
def prepare_mlp_params(w1, b1, w2, b2, *, compute_dtype=jnp.bfloat16):
    """Pad (lane-dense) and cast the weights ONCE; cache the result across calls so
    the per-call path does no weight-side HBM passes."""
    din, hidden = w1.shape
    dout = w2.shape[1]
    h_p = _feature_pad(hidden)
    dout_p = _feature_pad(dout)
    return dict(
        w1=_pad2(w1.astype(compute_dtype), din, h_p),
        b1=_pad2(jnp.reshape(b1, (1, -1)).astype(jnp.float32), 1, h_p),
        w2=_pad2(w2.astype(compute_dtype), h_p, dout_p),
        b2=_pad2(jnp.reshape(b2, (1, -1)).astype(jnp.float32), 1, dout_p),
        din=din, hidden=hidden, dout=dout, compute_dtype=compute_dtype,
    )


def mlp_forward(x, params, *, out_dtype=jnp.float32):
    """relu(x @ W1 + b1) @ W2 + b2 with pre-padded params from prepare_mlp_params."""
    din, dout = params["din"], params["dout"]
    w1_p, b1_p, w2_p, b2_p = params["w1"], params["b1"], params["w2"], params["b2"]
    h_p, dout_p = w1_p.shape[1], w2_p.shape[1]
    if x.shape[1] != din:
        raise ValueError(f"x has {x.shape[1]} features, expected {din}")
    B = x.shape[0]

    w_isz = _itemsize(params["compute_dtype"])
    x_isz = _itemsize(x.dtype)
    o_isz = _itemsize(out_dtype)

    # Generation-aware VMEM budget (v5e/v6e: 128 MiB, v7x: 64 MiB per TensorCore);
    # 75% leaves headroom for compiler-internal scratch.
    budget = int(_vmem_capacity_bytes() * 0.75)

    # Pick the hidden-dim (K) tile: largest divisor of H_p (multiple of 128) whose
    # weight slabs fit, then the batch tile from the remaining budget.
    th_cands = [t for t in (h_p, 4096, 2048, 1024, 512, 256, 128)
                if t <= h_p and h_p % t == 0]
    plan = None
    for th in th_cands:
        n_h = h_p // th
        w_bufs = 1 if n_h == 1 else 2          # resident -> Buffered(1); streamed -> 2
        wbytes = (w_bufs * (din * th + th * dout_p) * w_isz
                  + w_bufs * th * 4 + dout_p * 4)
        remaining = budget - wbytes
        if remaining <= 0:
            continue

        def fits(tb, _th=th, _rem=remaining):
            return _per_tile_bytes(tb, _th, din, dout_p, x_isz, o_isz) <= _rem

        tb = _choose_batch_tile(B, fits)
        if tb is not None:
            plan = (tb, th, n_h, wbytes)
            break
    if plan is None:
        raise ValueError(
            f"MLP dims too large to tile into VMEM (Din={din}, H_p={h_p}, "
            f"Dout_p={dout_p}, budget={budget} bytes)")
    TB, TH, n_h, weight_bytes = plan

    # Cap the scoped VMEM request at the actual footprint (+ margin), never 100%.
    footprint = weight_bytes + _per_tile_bytes(TB, TH, din, dout_p, x_isz, o_isz)
    vmem_limit = int(min(budget, max(footprint + (4 << 20), 32 << 20)))

    # Batch padding only when B is not a multiple of the tile (no feature padding of
    # x: the input dim is the contraction dim and uses a full-extent block).
    B_p = _round_up(B, TB)
    x_p = x if B_p == B else jnp.pad(x, ((0, B_p - B), (0, 0)))
    n_b = B_p // TB

    resident = (n_h == 1)

    def wspec(shape, imap, single):
        if single:
            return pl.BlockSpec(shape, imap, pipeline_mode=pl.Buffered(1))
        return pl.BlockSpec(shape, imap)

    in_specs = [
        pl.BlockSpec((TB, din), lambda i, h: (i, 0)),          # x: batch-tiled
        wspec((din, TH), lambda i, h: (0, h), resident),       # W1 (resident or streamed)
        wspec((1, TH), lambda i, h: (0, h), resident),         # b1
        wspec((TH, dout_p), lambda i, h: (h, 0), resident),    # W2
        wspec((1, dout_p), lambda i, h: (0, 0), True),         # b2: always resident
    ]
    out_spec = pl.BlockSpec((TB, dout_p), lambda i, h: (i, 0))

    out_p = pl.pallas_call(
        mlp_kernel,
        out_shape=jax.ShapeDtypeStruct((B_p, dout_p), out_dtype),
        grid=(n_b, n_h),
        in_specs=in_specs,
        out_specs=out_spec,
        scratch_shapes=[pltpu.VMEM((TB, dout_p), jnp.float32)],
        compiler_params=pltpu.CompilerParams(
            dimension_semantics=("parallel", "arbitrary"),
            vmem_limit_bytes=vmem_limit,
        ),
    )(x_p, w1_p, b1_p, w2_p, b2_p)

    if B_p != B or dout_p != dout:
        out_p = out_p[:B, :dout]
    return out_p


# --------------------------------------------------------------------------- init
def init_params(key, input_dim, hidden_dim, output_dim):
    # Deterministic init mimicking nn.Linear's U(-1/sqrt(fan_in), 1/sqrt(fan_in)).
    k1, k2, k3, k4 = jax.random.split(key, 4)
    lim1 = 1.0 / (input_dim ** 0.5)
    lim2 = 1.0 / (hidden_dim ** 0.5)
    w1 = jax.random.uniform(k1, (input_dim, hidden_dim), jnp.float32, -lim1, lim1)
    b1 = jax.random.uniform(k2, (1, hidden_dim), jnp.float32, -lim1, lim1)
    w2 = jax.random.uniform(k3, (hidden_dim, output_dim), jnp.float32, -lim2, lim2)
    b2 = jax.random.uniform(k4, (1, output_dim), jnp.float32, -lim2, lim2)
    return w1, b1, w2, b2


if __name__ == "__main__":
    input_dim, hidden_dim, output_dim = 32, 64, 16
    batch = 8

    key = jax.random.PRNGKey(0)
    kx, kp = jax.random.split(key)
    x = jax.random.normal(kx, (batch, input_dim), jnp.float32)
    w1, b1, w2, b2 = init_params(kp, input_dim, hidden_dim, output_dim)

    # Plain-JAX reference.
    ref = jnp.maximum(x @ w1 + b1, 0.0) @ w2 + b2

    # Default bf16 MXU feed (f32 accumulation + f32 bias/ReLU epilogue).
    params_bf16 = prepare_mlp_params(w1, b1, w2, b2, compute_dtype=jnp.bfloat16)
    out_bf16 = jax.block_until_ready(mlp_forward(x, params_bf16))
    assert out_bf16.shape == (batch, output_dim)
    assert jnp.allclose(out_bf16, ref, atol=3e-2, rtol=3e-2)

    # f32 MXU feed: exact vs reference.
    params_f32 = prepare_mlp_params(w1, b1, w2, b2, compute_dtype=jnp.float32)
    out_f32 = jax.block_until_ready(mlp_forward(x, params_f32))
    assert out_f32.shape == (batch, output_dim)
    assert jnp.allclose(out_f32, ref, atol=1e-5, rtol=1e-5)

    # Ragged batch (padding on the batch axis only) / multi-step batch grid.
    x2 = jax.random.normal(kx, (20, input_dim), jnp.float32)
    ref2 = jnp.maximum(x2 @ w1 + b1, 0.0) @ w2 + b2
    out2 = jax.block_until_ready(mlp_forward(x2, params_f32))
    assert out2.shape == (20, output_dim)
    assert jnp.allclose(out2, ref2, atol=1e-5, rtol=1e-5)

    print("KERNEL_OK")
</pallas_src>

<mosaic_0001>
module attributes {stable_mosaic.version = 11 : i64} {
  func.func @mlp_kernel(%arg0: i32, %arg1: i32, %arg2: memref<8x32xf32, #tpu.memory_space<vmem>>, %arg3: memref<32x128xbf16, #tpu.memory_space<vmem>>, %arg4: memref<1x128xf32, #tpu.memory_space<vmem>>, %arg5: memref<128x128xbf16, #tpu.memory_space<vmem>>, %arg6: memref<1x128xf32, #tpu.memory_space<vmem>>, %arg7: memref<8x128xf32, #tpu.memory_space<vmem>>, %arg8: memref<8x128xf32, #tpu.memory_space<vmem>>) attributes {dimension_semantics = [#tpu.dimension_semantics<parallel>, #tpu.dimension_semantics<arbitrary>], iteration_bounds = array<i64: 1, 1>, scalar_prefetch = 0 : i64, scratch_operands = 1 : i64, tpu.core_type = #tpu.core_type<tc>, window_params = [{transform_indices = @transform_0, window_bounds = array<i64: 8, 32>}, {pipeline_mode = #tpu.pipeline_mode<synchronous>, transform_indices = @transform_1, window_bounds = array<i64: 32, 128>}, {pipeline_mode = #tpu.pipeline_mode<synchronous>, transform_indices = @transform_2, window_bounds = array<i64: 1, 128>}, {pipeline_mode = #tpu.pipeline_mode<synchronous>, transform_indices = @transform_3, window_bounds = array<i64: 128, 128>}, {pipeline_mode = #tpu.pipeline_mode<synchronous>, transform_indices = @transform_4, window_bounds = array<i64: 1, 128>}, {transform_indices = @transform_5, window_bounds = array<i64: 8, 128>}]} {
    %c0_i32 = arith.constant 0 : i32
    %0 = arith.cmpi eq, %arg1, %c0_i32 : i32
    %1 = arith.extui %0 : i1 to i32
    %c0_i32_0 = arith.constant 0 : i32
    %2 = arith.cmpi ne, %1, %c0_i32_0 : i32
    scf.if %2 {
      %cst_16 = arith.constant 0.000000e+00 : f32
      %21 = vector.broadcast %cst_16 : f32 to vector<8x128xf32>
      %c0_17 = arith.constant 0 : index
      %c0_18 = arith.constant 0 : index
      %22 = vector.load %arg8[%c0_17, %c0_18] : memref<8x128xf32, #tpu.memory_space<vmem>>, vector<8x128xf32>
      tpu.vector_store %arg8[%c0_17, %c0_18], %21 {strides = array<i32>} : memref<8x128xf32, #tpu.memory_space<vmem>>, vector<8x128xf32>,
    } else {
    }
    %c0 = arith.constant 0 : index
    %c0_1 = arith.constant 0 : index
    %3 = vector.load %arg2[%c0, %c0_1] : memref<8x32xf32, #tpu.memory_space<vmem>>, vector<8x32xf32>
    %4 = arith.truncf %3 : vector<8x32xf32> to vector<8x32xbf16>
    %c0_2 = arith.constant 0 : index
    %c0_3 = arith.constant 0 : index
    %5 = vector.load %arg3[%c0_2, %c0_3] : memref<32x128xbf16, #tpu.memory_space<vmem>>, vector<32x128xbf16>
    %cst = arith.constant dense<0.000000e+00> : vector<8x128xf32>
    %6 = tpu.matmul %4, %5, %cst {dimension_numbers = #tpu.dot_dimension_numbers<[1], [0], [0], [1], [0, 0, 1, 1], [], []>} : vector<8x32xbf16>, vector<32x128xbf16>, vector<8x128xf32> -> vector<8x128xf32>
    %c0_4 = arith.constant 0 : index
    %c0_5 = arith.constant 0 : index
    %7 = vector.load %arg4[%c0_4, %c0_5] : memref<1x128xf32, #tpu.memory_space<vmem>>, vector<1x128xf32>
    %8 = vector.broadcast %7 : vector<1x128xf32> to vector<8x128xf32>
    %9 = arith.addf %6, %8 : vector<8x128xf32>
    %cst_6 = arith.constant 0.000000e+00 : f32
    %10 = vector.broadcast %cst_6 : f32 to vector<8x128xf32>
    %11 = arith.maximumf %9, %10 : vector<8x128xf32>
    %c0_7 = arith.constant 0 : index
    %c0_8 = arith.constant 0 : index
    %12 = vector.load %arg8[%c0_7, %c0_8] : memref<8x128xf32, #tpu.memory_space<vmem>>, vector<8x128xf32>
    %13 = arith.truncf %11 : vector<8x128xf32> to vector<8x128xbf16>
    %c0_9 = arith.constant 0 : index
    %c0_10 = arith.constant 0 : index
    %14 = vector.load %arg5[%c0_9, %c0_10] : memref<128x128xbf16, #tpu.memory_space<vmem>>, vector<128x128xbf16>
    %cst_11 = arith.constant dense<0.000000e+00> : vector<8x128xf32>
    %15 = tpu.matmul %13, %14, %cst_11 {dimension_numbers = #tpu.dot_dimension_numbers<[1], [0], [0], [1], [0, 0, 1, 1], [], []>} : vector<8x128xbf16>, vector<128x128xbf16>, vector<8x128xf32> -> vector<8x128xf32>
    %16 = arith.addf %12, %15 : vector<8x128xf32>
    %c0_12 = arith.constant 0 : index
    %c0_13 = arith.constant 0 : index
    %17 = vector.load %arg8[%c0_12, %c0_13] : memref<8x128xf32, #tpu.memory_space<vmem>>, vector<8x128xf32>
    tpu.vector_store %arg8[%c0_12, %c0_13], %16 {strides = array<i32>} : memref<8x128xf32, #tpu.memory_space<vmem>>, vector<8x128xf32>,
    %c0_i32_14 = arith.constant 0 : i32
    %18 = arith.cmpi eq, %arg1, %c0_i32_14 : i32
    %19 = arith.extui %18 : i1 to i32
    %c0_i32_15 = arith.constant 0 : i32
    %20 = arith.cmpi ne, %19, %c0_i32_15 : i32
    scf.if %20 {
      %c0_16 = arith.constant 0 : index
      %c0_17 = arith.constant 0 : index
      %21 = vector.load %arg8[%c0_16, %c0_17] : memref<8x128xf32, #tpu.memory_space<vmem>>, vector<8x128xf32>
      %c0_18 = arith.constant 0 : index
      %c0_19 = arith.constant 0 : index
      %22 = vector.load %arg6[%c0_18, %c0_19] : memref<1x128xf32, #tpu.memory_space<vmem>>, vector<1x128xf32>
      %23 = vector.broadcast %22 : vector<1x128xf32> to vector<8x128xf32>
      %24 = arith.addf %21, %23 : vector<8x128xf32>
      %c0_20 = arith.constant 0 : index
      %c0_21 = arith.constant 0 : index
      %25 = vector.load %arg7[%c0_20, %c0_21] : memref<8x128xf32, #tpu.memory_space<vmem>>, vector<8x128xf32>
      tpu.vector_store %arg7[%c0_20, %c0_21], %24 {strides = array<i32>} : memref<8x128xf32, #tpu.memory_space<vmem>>, vector<8x128xf32>,
    } else {
    }
    return
  }
  func.func @transform_0(%arg0: i32, %arg1: i32) -> (i32, i32) {
    %c0_i32 = arith.constant 0 : i32
    %c0_i32_0 = arith.constant 0 : i32
    return %arg0, %c0_i32 : i32, i32
  }
  func.func @transform_1(%arg0: i32, %arg1: i32) -> (i32, i32) {
    %c0_i32 = arith.constant 0 : i32
    %c0_i32_0 = arith.constant 0 : i32
    return %c0_i32, %arg1 : i32, i32
  }
  func.func @transform_2(%arg0: i32, %arg1: i32) -> (i32, i32) {
    %c0_i32 = arith.constant 0 : i32
    %c0_i32_0 = arith.constant 0 : i32
    return %c0_i32, %arg1 : i32, i32
  }
  func.func @transform_3(%arg0: i32, %arg1: i32) -> (i32, i32) {
    %c0_i32 = arith.constant 0 : i32
    %c0_i32_0 = arith.constant 0 : i32
    return %arg1, %c0_i32 : i32, i32
  }
  func.func @transform_4(%arg0: i32, %arg1: i32) -> (i32, i32) {
    %c0_i32 = arith.constant 0 : i32
    %c0_i32_0 = arith.constant 0 : i32
    %c0_i32_1 = arith.constant 0 : i32
    return %c0_i32, %c0_i32_0 : i32, i32
  }
  func.func @transform_5(%arg0: i32, %arg1: i32) -> (i32, i32) {
    %c0_i32 = arith.constant 0 : i32
    %c0_i32_0 = arith.constant 0 : i32
    return %arg0, %c0_i32 : i32, i32
  }
}

</mosaic_0001>

<bundles_post_ra>
// kernel: tpu_custom_call.1
= control target key start
LH: loop header
LB: loop body
LE: loop exit
PB: predicated region body
PF: predicated region fallthrough
CT: control target
= control target key end

     0   :  { %10 = vsyncpa [#allocation4], 0  ;;  %s486_s0 = inlined_call_operand.hbm [shape: f32[8,32], index: 0, kind: input, shape index: {}]   ;;  %s487_s1 = inlined_call_operand.hbm [shape: bf16[32,128], index: 1, kind: input, shape index: {}]   ;;  %s488_s2 = inlined_call_operand.vmem [shape: f32[1,128], index: 2, kind: input, shape index: {}]   ;;  %s489_s3 = inlined_call_operand.hbm [shape: bf16[128,128], index: 3, kind: input, shape index: {}]   ;;  %s490_s4 = inlined_call_operand.vmem [shape: f32[1,128], index: 4, kind: input, shape index: {}]   ;;  %s491_s5 = inlined_call_operand.hbm [shape: f32[8,128], index: 5, kind: output, shape index: {}]  }
   0x1   :  { %11 = vsyncpa [#allocation7], 0 }
   0x2   :  { %12 = vsyncpa [#allocation5], 0  ;;  %s430_s18 = smov [#allocation6]  }
   0x3   :  { %s28_s19 = sshll.u32 %s430_s18, 4  ;;  %s29_s19 = int_to_ptr.vmem [resolvable:$true] %s28_s19 }
   0x4   :  { %s352_s20 = scalar_lea.vmem %s29_s19, 256  ;;  %p357_p1 = scmp.lt.s32.totalorder %s29_s19, %s29_s19 }
   0x5   :  { %p353_p0 = scmp.ne.s32.totalorder %s29_s19, %s352_s20  ;;  %p358_p2 = scmp.lt.s32.totalorder %s352_s20, %s352_s20 }
   0x7   :  { %p359_p3 = por %p358_p2, %p357_p1 }
   0x9   :  { %p360_p4 = pnand %p359_p3, %p353_p0 }
   0xb   :  { %363 = shalt.err (!%p360_p4)
}
   0xc   :  { %s431_s21 = smov 64   ;;  %s432_s22 = smov 4  }
   0xd   :  { %34 = dma.hbm_to_vmem [thread:$0]  %s487_s1, 256, %s29_s19, [#allocation7], %s431_s21, %s431_s21, %s432_s22  }
   0xe   :  { %s433_s25 = smov [#allocation3]   ;;  %s434_s27 = smov [#allocation8]  }
   0xf   :  { %s19_s26 = sshll.u32 %s433_s25, 4  ;;  %s42_s28 = sshll.u32 %s434_s27, 4  ;;  %s20_s26 = int_to_ptr.vmem [resolvable:$true] %s19_s26  ;;  %s43_s28 = int_to_ptr.vmem [resolvable:$true] %s42_s28 }
  0x10   :  { %s372_s29 = scalar_lea.vmem %s20_s26, 128  ;;  %p377_p6 = scmp.lt.s32.totalorder %s20_s26, %s20_s26 }
  0x11   :  { %p373_p5 = scmp.ne.s32.totalorder %s20_s26, %s372_s29  ;;  %p378_p7 = scmp.lt.s32.totalorder %s372_s29, %s372_s29 }
  0x13   :  { %p379_p8 = por %p378_p7, %p377_p6 }
  0x15   :  { %p380_p9 = pnand %p379_p8, %p373_p5 }
  0x17   :  { %383 = shalt.err (!%p380_p9)
}
  0x18   :  { %22 = dma.hbm_to_vmem [thread:$0]  %s486_s0, 128, %s20_s26, [#allocation4]  }
  0x19   :  { %s392_s7 = scalar_lea.vmem %s43_s28, 1024  ;;  %p397_p11 = scmp.lt.s32.totalorder %s43_s28, %s43_s28 }
  0x1a   :  { %p393_p10 = scmp.ne.s32.totalorder %s43_s28, %s392_s7  ;;  %p398_p12 = scmp.lt.s32.totalorder %s392_s7, %s392_s7 }
  0x1c   :  { %p399_p13 = por %p398_p12, %p397_p11 }
  0x1e   :  { %p400_p0 = pnand %p399_p13, %p393_p10 }
  0x20   :  { %403 = shalt.err (!%p400_p0)
}
  0x21   :  { %48 = dma.hbm_to_vmem [thread:$0]  %s489_s3, 1024, %s43_s28, [#allocation7], %s431_s21, %s431_s21, %s432_s22  }
  0x22   :  { %424 = dma.done.wait [#allocation4], 128  }
  0x23   :  { %425 = vsyncadd [#allocation4], 4294967168 }
  0x24   :  { %426 = dma.done.wait [#allocation7], 1280  }
  0x25   :  { %427 = vsyncadd [#allocation7], 4294966016  ;;  %v435_v0 = vmov 0.0   ;;  %vm436_vm0 = vmmov 0   ;;  %v334_v1 = vld [vmem:[#allocation6 + $0x8] sm:$0xff]   ;;  %v335_v2 = vld [vmem:[#allocation6] sm:$0xff]  }
  0x26   :  { %298 = vmatprep.subr.bf16.mxu0 %v435_v0  ;;  %302 = vmatprep.mubr.msk.bf16.mxu0 %vm436_vm0, %v435_v0  ;;  %v66_v3 = vld [vmem:[#allocation3] sm:$0xff]  ;;  %v336_v4 = vld [vmem:[#allocation8 + $0x38] sm:$0xff]   ;;  %v337_v6 = vld [vmem:[#allocation8 + $0x30] sm:$0xff]   ;;  %vm91_vm1 = vcmask 261120   ;;  %s437_s11 = smov [#allocation9]  }
  0x27   :  { %306 = vmatprep.subr.bf16.mxu1 %v435_v0  ;;  %322 = vmatprep.mubr.msk.bf16.mxu1 %vm436_vm0, %v435_v0  ;;  %v67_v5 = vpack.c.bf16 %v66_v3, %v66_v3  ;;  %v338_v7 = vld [vmem:[#allocation8 + $0x28] sm:$0xff]   ;;  %v339_v8 = vld [vmem:[#allocation8 + $0x20] sm:$0xff]   ;;  %v340_v9 = vld [vmem:[#allocation8 + $0x18] sm:$0xff]   ;;  %s263_s12 = sshll.u32 %s437_s11, 4  ;;  %s264_s12 = int_to_ptr.vmem [resolvable:$true] %s263_s12 }
  0x28   :  { %299 = vmatpush3.bf16.msra.mxu0 %v334_v1  ;;  %307 = vmatpush3.bf16.msra.mxu1 %v336_v4  ;;  %v341_v10 = vld [vmem:[#allocation8 + $0x10] sm:$0xff]   ;;  %v342_v11 = vld [vmem:[#allocation8 + $0x8] sm:$0xff]   ;;  %v343_v12 = vld [vmem:[#allocation8] sm:$0xff]   ;;  %p409_p2 = scmp.lt.s32.totalorder %s264_s12, %s264_s12 }
  0x29   :  { %300 = vmatprep.subr.bf16.mxu0 %v435_v0  ;;  %308 = vmatprep.subr.bf16.mxu1 %v435_v0  ;;  %v273_v13 = vld [vmem:[%s488_s2] ss:$0 sm:$0xff]  ;;  %s404_s2 = scalar_lea.vmem %s264_s12, 128 }
  0x2a   :  { %v285_v21 = vld [vmem:[%s490_s4] ss:$0 sm:$0xff]  ;;  %p405_p1 = scmp.ne.s32.totalorder %s264_s12, %s404_s2  ;;  %p410_p3 = scmp.lt.s32.totalorder %s404_s2, %s404_s2 }
  0x2c   :  { %301 = vmatpush3.bf16.msra.mxu0 %v335_v2  ;;  %309 = vmatpush3.bf16.msra.mxu1 %v337_v6  ;;  %p411_p4 = por %p410_p3, %p409_p2 }
  0x2d   :  { %310 = vmatprep.subr.bf16.mxu1 %v435_v0 }
  0x2e   :  { %p412_p5 = pnand %p411_p4, %p405_p1 }
  0x2f   :  { %303 = vmatmul.mubr.msk.bf16.vlgmr.msra.gmra.mxu0 %vm91_vm1, %v67_v5 }
  0x30   :  { %311 = vmatpush3.bf16.msra.mxu1 %v338_v7 }
  0x31   :  { %312 = vmatprep.subr.bf16.mxu1 %v435_v0 }
  0x34   :  { %313 = vmatpush3.bf16.msra.mxu1 %v339_v8 }
  0x35   :  { %314 = vmatprep.subr.bf16.mxu1 %v435_v0 }
  0x38   :  { %315 = vmatpush3.bf16.msra.mxu1 %v340_v9 }
  0x39   :  { %316 = vmatprep.subr.bf16.mxu1 %v435_v0 }
  0x3c   :  { %317 = vmatpush3.bf16.msra.mxu1 %v341_v10 }
  0x3d   :  { %318 = vmatprep.subr.bf16.mxu1 %v435_v0 }
  0x40   :  { %319 = vmatpush3.bf16.msra.mxu1 %v342_v11 }
  0x41   :  { %320 = vmatprep.subr.bf16.mxu1 %v435_v0 }
  0x44   :  { %321 = vmatpush3.bf16.msra.mxu1 %v343_v12 }
  0xef   :  { %v129_v14 = vpop.f32.mrf.mxu0 }
  0xf0   :  { %v130_v15 = vadd.f32 %v273_v13, %v129_v14 }
  0xf1   :  { %v304_v16 = vpop.f32.mrf.mxu0 }
  0xf2   :  { %v135_v17 = vmax.f32 %v130_v15, 0.0 }
  0xf3   :  { %v132_v18 = vpop.f32.mrf.mxu0 }
  0xf4   :  { %v137_v19 = vpack.c.bf16 %v135_v17, %v135_v17 }
  0xf5   :  { %v305_v20 = vpop.f32.mrf.mxu0 }
  0xf6   :  { %323 = vmatmul.mubr.bf16.vlgmr.msra.gmra.mxu1 %v137_v19 }
 0x1b6   :  { %v236_v22 = vpop.f32.mrf.mxu1 }
 0x1b7   :  { %v255_v23 = vadd.f32 %v285_v21, %v236_v22 }
 0x1b8   :  { %v324_v24 = vpop.f32.mrf.mxu1 }
 0x1b9   :  { %256 = vst [vmem:[#allocation9] sm:$0xff] %v255_v23 }
 0x1ba   :  { %v239_v25 = vpop.f32.mrf.mxu1 }
 0x1bb   :  { %415 = shalt.err (!%p412_p5)
}
 0x1bc   :  { %266 = dma.vmem_to_hbm [thread:$0]  %s264_s12, 128, %s491_s5, [#allocation5]   ;;  %v325_v26 = vpop.f32.mrf.mxu1 }
 0x1bd   :  { %428 = dma.done.wait [#allocation5], 128  }
 0x1be   :  { %429 = vsyncadd [#allocation5], 4294967168 }
 0x1bf   :  { %270 = vsyncpa [#allocation4], 1 }
 0x1c0   :  { %271 = vsyncpa [#allocation7], 1 }
 0x1c1   :  { %272 = vsyncpa [#allocation5], 1 }

</bundles_post_ra>
